<compile_context>
chip_gen: v6e
topology: v6e:2x2x1
jax: 0.10.0
libtpu: 0.0.40
codegen_flags: <defaults>
</compile_context>

<pallas_src>
import jax
import jax.numpy as jnp
from jax.experimental import pallas as pl
from jax.experimental.pallas import tpu as pltpu

NUM_CLASSES = 2   # fc5 real output width
K_IN = 63         # flattened input features
K_PAD = 64        # fc1 contraction dim padded 63 -> 64 (inside the kernel)
MAX_TILE_B = 8192 # cap so double-buffered blocks + f32 temps fit v7x's 64 MiB


def _round_up(n, m):
    return ((n + m - 1) // m) * m


def _mlp_kernel(x_ref, w1_ref, b1_ref, w2_ref, b2_ref, w3_ref, b3_ref,
                w5_ref, b5_ref, out_ref, xpad_ref):
    bf16 = jnp.bfloat16
    t = xpad_ref.shape[0]

    # In-kernel f32->bf16 cast and zero-pad 63 -> 64 for an aligned contraction
    # (w1 row 63 is also zero, so the pad column contributes exactly 0).
    xpad_ref[:, K_IN:K_PAD] = jnp.zeros((t, K_PAD - K_IN), bf16)
    xpad_ref[:, 0:K_IN] = x_ref[...].astype(bf16)

    # fc1 + relu : (T,64)bf16 @ (64,256)bf16 -> f32 accum, carry bf16
    h = jnp.dot(xpad_ref[...], w1_ref[...], preferred_element_type=jnp.float32)
    h = jnp.maximum(h + b1_ref[...], 0.0).astype(bf16)          # (T,256) bf16

    # fc2 + relu : (T,256) @ (256,128)
    h = jnp.dot(h, w2_ref[...], preferred_element_type=jnp.float32)
    h = jnp.maximum(h + b2_ref[...], 0.0).astype(bf16)          # (T,128) bf16

    # fc3 + relu, applied twice with the same weights (matches PyTorch forward)
    h = jnp.dot(h, w3_ref[...], preferred_element_type=jnp.float32)
    h = jnp.maximum(h + b3_ref[...], 0.0).astype(bf16)
    h = jnp.dot(h, w3_ref[...], preferred_element_type=jnp.float32)
    h = jnp.maximum(h + b3_ref[...], 0.0)                       # (T,128) f32

    # fc5 on the VPU/XLU: only 2 real classes -> two broadcast multiplies +
    # cross-lane reductions instead of a 128-padded MXU matmul.  Biases come
    # from SMEM as scalars.
    l0 = jnp.sum(h * w5_ref[0:1, :], axis=1, keepdims=True) + b5_ref[0]
    l1 = jnp.sum(h * w5_ref[1:2, :], axis=1, keepdims=True) + b5_ref[1]

    # 2-class closed-form log_softmax: lse = max + log(1 + exp(min - max)).
    m = jnp.maximum(l0, l1)
    lse = m + jnp.log(1.0 + jnp.exp(jnp.minimum(l0, l1) - m))
    out_ref[:, 0:1] = l0 - lse
    out_ref[:, 1:2] = l1 - lse


def _choose_tile(b, requested):
    """Large tiles (amortize per-step overhead) without gross batch padding."""
    cap = max(16, min(int(requested), MAX_TILE_B))
    if b <= cap:
        return b                              # one full-extent block (legal)
    n_tiles = -(-b // cap)
    return _round_up(-(-b // n_tiles), 16)    # balanced, multiple of 16, <= b


def _vmem_limit_bytes(tile_b):
    """Rough per-step footprint: double-buffered x/out blocks, xpad scratch,
    weights, plus 2x headroom for compiler-managed layer intermediates."""
    io = 2 * tile_b * (K_IN * 4 + NUM_CLASSES * 4)
    scratch = tile_b * K_PAD * 2
    weights = 2 * 2 * (K_PAD * 256 + 256 * 128 + 128 * 128) \
        + 4 * (256 + 128 + 128 + 2 * 128 + 2)
    inter = tile_b * (256 + 128) * (4 + 2)
    est = io + scratch + weights + 2 * inter
    return int(min(max(est, 32 << 20), 48 << 20))   # <= 48 MiB: safe on v7x


def cnn_forward(x_nchw, params, *, tile_b=8192):
    """x_nchw: (B, 1, 63, 1) float32 (NCHW, as the PyTorch module expects)."""
    b = x_nchw.shape[0]
    x2d = x_nchw.reshape(b, -1).astype(jnp.float32)   # (B, 63); metadata-only
    assert x2d.shape[1] == K_IN

    w1, b1, w2, b2, w3, b3, w5, b5 = params
    # One-time tiny weight prep: bf16 MXU weights (w1 K-padded 63->64 with a
    # zero row), fc5 transposed to (2,128) f32 rows for the VPU path, f32
    # biases (b5 as flat SMEM scalars).
    w1p = jnp.pad(w1, ((0, K_PAD - K_IN), (0, 0))).astype(jnp.bfloat16)  # (64,256)
    w2b = w2.astype(jnp.bfloat16)                                        # (256,128)
    w3b = w3.astype(jnp.bfloat16)                                        # (128,128)
    w5t = jnp.transpose(w5.astype(jnp.float32))                          # (2,128)
    b1f = b1.astype(jnp.float32).reshape(1, -1)
    b2f = b2.astype(jnp.float32).reshape(1, -1)
    b3f = b3.astype(jnp.float32).reshape(1, -1)
    b5f = b5.astype(jnp.float32).reshape(-1)                             # (2,)

    tb = _choose_tile(b, tile_b)
    grid = (pl.cdiv(b, tb),)

    # Explicit per-operand specs.  Weights/biases use constant index_maps so
    # they stay VMEM-resident across grid steps; x / out are batch-tiled.
    # (Left at the default double-buffer; pipeline_mode=pl.Buffered(1) on the
    #  ~164 KiB of constant weights would only save a trivial amount of VMEM.)
    in_specs = [
        pl.BlockSpec((tb, K_IN), lambda i: (i, 0)),            # x (f32, unpadded)
        pl.BlockSpec(w1p.shape, lambda i: (0, 0)),             # w1 (64,256) bf16
        pl.BlockSpec(b1f.shape, lambda i: (0, 0)),             # b1 (1,256) f32
        pl.BlockSpec(w2b.shape, lambda i: (0, 0)),             # w2 (256,128) bf16
        pl.BlockSpec(b2f.shape, lambda i: (0, 0)),             # b2 (1,128) f32
        pl.BlockSpec(w3b.shape, lambda i: (0, 0)),             # w3 (128,128) bf16
        pl.BlockSpec(b3f.shape, lambda i: (0, 0)),             # b3 (1,128) f32
        pl.BlockSpec(w5t.shape, lambda i: (0, 0)),             # w5^T (2,128) f32
        pl.BlockSpec(memory_space=pltpu.MemorySpace.SMEM),     # b5 (2,) scalars
    ]
    out_spec = pl.BlockSpec((tb, NUM_CLASSES), lambda i: (i, 0))

    # TODO(synk): on v7x, if profiling shows only one TensorCore in use,
    # switch the batch axis to pltpu.CORE_PARALLEL (no-op chips would reject it
    # here, so we keep the portable "parallel").
    out = pl.pallas_call(
        _mlp_kernel,
        out_shape=jax.ShapeDtypeStruct((b, NUM_CLASSES), jnp.float32),
        grid=grid,
        in_specs=in_specs,
        out_specs=out_spec,
        scratch_shapes=[pltpu.VMEM((tb, K_PAD), jnp.bfloat16)],
        compiler_params=pltpu.CompilerParams(
            dimension_semantics=("parallel",),
            vmem_limit_bytes=_vmem_limit_bytes(tb)),
    )(x2d, w1p, b1f, w2b, b2f, w3b, b3f, w5t, b5f)

    return out


def init_params(key):
    """Deterministic parameter init with the shapes from CNN.__init__.
    Weights stored transposed relative to torch: (in_features, out_features)."""
    ks = jax.random.split(key, 8)

    def linear(kw, kb, fan_in, fan_out):
        bound = 1.0 / jnp.sqrt(fan_in)
        w = jax.random.uniform(kw, (fan_in, fan_out), jnp.float32, -bound, bound)
        b = jax.random.uniform(kb, (1, fan_out), jnp.float32, -bound, bound)
        return w, b

    w1, b1 = linear(ks[0], ks[1], 63, 256)    # fc1
    w2, b2 = linear(ks[2], ks[3], 256, 128)   # fc2
    w3, b3 = linear(ks[4], ks[5], 128, 128)   # fc3 (used twice in forward)
    w5, b5 = linear(ks[6], ks[7], 128, 2)     # fc5
    # TODO(synk): conv1, conv2, MaxPool and fc4 are defined in __init__ but
    # never used in forward(); they are intentionally not instantiated.
    return (w1, b1, w2, b2, w3, b3, w5, b5)


def reference_forward_matched(x_nchw, params):
    """Pure-JAX reference with the same dtypes as the kernel (bf16 matmuls with
    f32 accumulation for fc1/fc2/fc3/fc3, f32 fc5) for a tight comparison."""
    w1, b1, w2, b2, w3, b3, w5, b5 = params
    bf16 = jnp.bfloat16
    x = x_nchw.reshape(x_nchw.shape[0], -1)

    def mm(h, w):
        return jnp.dot(h.astype(bf16), w.astype(bf16),
                       preferred_element_type=jnp.float32)

    h = jnp.maximum(mm(x, w1) + b1, 0.0)
    h = jnp.maximum(mm(h, w2) + b2, 0.0)
    h = jnp.maximum(mm(h, w3) + b3, 0.0)
    h = jnp.maximum(mm(h, w3) + b3, 0.0)
    logits = h @ w5 + b5                      # f32, like the kernel's VPU fc5
    return jax.nn.log_softmax(logits, axis=1)


def reference_forward_f32(x_nchw, params):
    """Full-f32 reference identical to the PyTorch forward semantics."""
    w1, b1, w2, b2, w3, b3, w5, b5 = params
    x = x_nchw.reshape(x_nchw.shape[0], -1)
    h = jax.nn.relu(x @ w1 + b1)
    h = jax.nn.relu(h @ w2 + b2)
    h = jax.nn.relu(h @ w3 + b3)
    h = jax.nn.relu(h @ w3 + b3)
    logits = h @ w5 + b5
    return jax.nn.log_softmax(logits, axis=1)


if __name__ == "__main__":
    key = jax.random.PRNGKey(0)
    k_x, k_p = jax.random.split(key)

    batch = 2
    # PyTorch NCHW input: (B, 1, 63, 1) -> forward views it as (B, 63)
    x = jax.random.normal(k_x, (batch, 1, 63, 1), dtype=jnp.float32)
    params = init_params(k_p)

    out = jax.block_until_ready(cnn_forward(x, params))
    assert out.shape == (batch, NUM_CLASSES)

    # Tight check vs the dtype-matched reference.
    ref_matched = reference_forward_matched(x, params)
    assert jnp.allclose(out, ref_matched, atol=2e-3, rtol=2e-3)

    # Loose sanity check vs the full-f32 PyTorch-equivalent reference
    # (difference is purely bf16 rounding of the hidden-layer matmul operands).
    ref_f32 = reference_forward_f32(x, params)
    assert jnp.allclose(out, ref_f32, atol=1e-1, rtol=1e-1)

    print("KERNEL_OK")
</pallas_src>

<mosaic_0001>
module attributes {stable_mosaic.version = 11 : i64} {
  func.func @_mlp_kernel(%arg0: i32, %arg1: memref<2x63xf32, #tpu.memory_space<vmem>>, %arg2: memref<64x256xbf16, #tpu.memory_space<vmem>>, %arg3: memref<1x256xf32, #tpu.memory_space<vmem>>, %arg4: memref<256x128xbf16, #tpu.memory_space<vmem>>, %arg5: memref<1x128xf32, #tpu.memory_space<vmem>>, %arg6: memref<128x128xbf16, #tpu.memory_space<vmem>>, %arg7: memref<1x128xf32, #tpu.memory_space<vmem>>, %arg8: memref<2x128xf32, #tpu.memory_space<vmem>>, %arg9: memref<2xf32, #tpu.memory_space<smem>>, %arg10: memref<2x2xf32, #tpu.memory_space<vmem>>, %arg11: memref<2x64xbf16, #tpu.memory_space<vmem>>) attributes {dimension_semantics = [#tpu.dimension_semantics<parallel>], iteration_bounds = array<i64: 1>, scalar_prefetch = 0 : i64, scratch_operands = 1 : i64, tpu.core_type = #tpu.core_type<tc>, window_params = [{transform_indices = @transform_0, window_bounds = array<i64: 2, 63>}, {pipeline_mode = #tpu.pipeline_mode<synchronous>, transform_indices = @transform_1, window_bounds = array<i64: 64, 256>}, {pipeline_mode = #tpu.pipeline_mode<synchronous>, transform_indices = @transform_2, window_bounds = array<i64: 1, 256>}, {pipeline_mode = #tpu.pipeline_mode<synchronous>, transform_indices = @transform_3, window_bounds = array<i64: 256, 128>}, {pipeline_mode = #tpu.pipeline_mode<synchronous>, transform_indices = @transform_4, window_bounds = array<i64: 1, 128>}, {pipeline_mode = #tpu.pipeline_mode<synchronous>, transform_indices = @transform_5, window_bounds = array<i64: 128, 128>}, {pipeline_mode = #tpu.pipeline_mode<synchronous>, transform_indices = @transform_6, window_bounds = array<i64: 1, 128>}, {pipeline_mode = #tpu.pipeline_mode<synchronous>, transform_indices = @transform_7, window_bounds = array<i64: 2, 128>}, {transform_indices = @transform_8, window_bounds = array<i64: 2>}, {transform_indices = @transform_9, window_bounds = array<i64: 2, 2>}]} {
    %cst = arith.constant 0.000000e+00 : bf16
    %0 = vector.broadcast %cst : bf16 to vector<2x1xbf16>
    %c0 = arith.constant 0 : index
    %c63 = arith.constant 63 : index
    %1 = vector.load %arg11[%c0, %c63] : memref<2x64xbf16, #tpu.memory_space<vmem>>, vector<2x1xbf16>
    tpu.vector_store %arg11[%c0, %c63], %0 {strides = array<i32>} : memref<2x64xbf16, #tpu.memory_space<vmem>>, vector<2x1xbf16>,
    %c0_0 = arith.constant 0 : index
    %c0_1 = arith.constant 0 : index
    %2 = vector.load %arg1[%c0_0, %c0_1] : memref<2x63xf32, #tpu.memory_space<vmem>>, vector<2x63xf32>
    %3 = arith.truncf %2 : vector<2x63xf32> to vector<2x63xbf16>
    %c0_2 = arith.constant 0 : index
    %c0_3 = arith.constant 0 : index
    %4 = vector.load %arg11[%c0_2, %c0_3] : memref<2x64xbf16, #tpu.memory_space<vmem>>, vector<2x63xbf16>
    tpu.vector_store %arg11[%c0_2, %c0_3], %3 {strides = array<i32>} : memref<2x64xbf16, #tpu.memory_space<vmem>>, vector<2x63xbf16>,
    %c0_4 = arith.constant 0 : index
    %c0_5 = arith.constant 0 : index
    %5 = vector.load %arg11[%c0_4, %c0_5] : memref<2x64xbf16, #tpu.memory_space<vmem>>, vector<2x64xbf16>
    %c0_6 = arith.constant 0 : index
    %c0_7 = arith.constant 0 : index
    %6 = vector.load %arg2[%c0_6, %c0_7] : memref<64x256xbf16, #tpu.memory_space<vmem>>, vector<64x256xbf16>
    %cst_8 = arith.constant dense<0.000000e+00> : vector<2x256xf32>
    %7 = tpu.matmul %5, %6, %cst_8 {dimension_numbers = #tpu.dot_dimension_numbers<[1], [0], [0], [1], [0, 0, 1, 1], [], []>} : vector<2x64xbf16>, vector<64x256xbf16>, vector<2x256xf32> -> vector<2x256xf32>
    %c0_9 = arith.constant 0 : index
    %c0_10 = arith.constant 0 : index
    %8 = vector.load %arg3[%c0_9, %c0_10] : memref<1x256xf32, #tpu.memory_space<vmem>>, vector<1x256xf32>
    %9 = vector.broadcast %8 : vector<1x256xf32> to vector<2x256xf32>
    %10 = arith.addf %7, %9 : vector<2x256xf32>
    %cst_11 = arith.constant 0.000000e+00 : f32
    %11 = vector.broadcast %cst_11 : f32 to vector<2x256xf32>
    %12 = arith.maximumf %10, %11 : vector<2x256xf32>
    %13 = arith.truncf %12 : vector<2x256xf32> to vector<2x256xbf16>
    %c0_12 = arith.constant 0 : index
    %c0_13 = arith.constant 0 : index
    %14 = vector.load %arg4[%c0_12, %c0_13] : memref<256x128xbf16, #tpu.memory_space<vmem>>, vector<256x128xbf16>
    %cst_14 = arith.constant dense<0.000000e+00> : vector<2x128xf32>
    %15 = tpu.matmul %13, %14, %cst_14 {dimension_numbers = #tpu.dot_dimension_numbers<[1], [0], [0], [1], [0, 0, 1, 1], [], []>} : vector<2x256xbf16>, vector<256x128xbf16>, vector<2x128xf32> -> vector<2x128xf32>
    %c0_15 = arith.constant 0 : index
    %c0_16 = arith.constant 0 : index
    %16 = vector.load %arg5[%c0_15, %c0_16] : memref<1x128xf32, #tpu.memory_space<vmem>>, vector<1x128xf32>
    %17 = vector.broadcast %16 : vector<1x128xf32> to vector<2x128xf32>
    %18 = arith.addf %15, %17 : vector<2x128xf32>
    %cst_17 = arith.constant 0.000000e+00 : f32
    %19 = vector.broadcast %cst_17 : f32 to vector<2x128xf32>
    %20 = arith.maximumf %18, %19 : vector<2x128xf32>
    %21 = arith.truncf %20 : vector<2x128xf32> to vector<2x128xbf16>
    %c0_18 = arith.constant 0 : index
    %c0_19 = arith.constant 0 : index
    %22 = vector.load %arg6[%c0_18, %c0_19] : memref<128x128xbf16, #tpu.memory_space<vmem>>, vector<128x128xbf16>
    %cst_20 = arith.constant dense<0.000000e+00> : vector<2x128xf32>
    %23 = tpu.matmul %21, %22, %cst_20 {dimension_numbers = #tpu.dot_dimension_numbers<[1], [0], [0], [1], [0, 0, 1, 1], [], []>} : vector<2x128xbf16>, vector<128x128xbf16>, vector<2x128xf32> -> vector<2x128xf32>
    %c0_21 = arith.constant 0 : index
    %c0_22 = arith.constant 0 : index
    %24 = vector.load %arg7[%c0_21, %c0_22] : memref<1x128xf32, #tpu.memory_space<vmem>>, vector<1x128xf32>
    %25 = vector.broadcast %24 : vector<1x128xf32> to vector<2x128xf32>
    %26 = arith.addf %23, %25 : vector<2x128xf32>
    %cst_23 = arith.constant 0.000000e+00 : f32
    %27 = vector.broadcast %cst_23 : f32 to vector<2x128xf32>
    %28 = arith.maximumf %26, %27 : vector<2x128xf32>
    %29 = arith.truncf %28 : vector<2x128xf32> to vector<2x128xbf16>
    %c0_24 = arith.constant 0 : index
    %c0_25 = arith.constant 0 : index
    %30 = vector.load %arg6[%c0_24, %c0_25] : memref<128x128xbf16, #tpu.memory_space<vmem>>, vector<128x128xbf16>
    %cst_26 = arith.constant dense<0.000000e+00> : vector<2x128xf32>
    %31 = tpu.matmul %29, %30, %cst_26 {dimension_numbers = #tpu.dot_dimension_numbers<[1], [0], [0], [1], [0, 0, 1, 1], [], []>} : vector<2x128xbf16>, vector<128x128xbf16>, vector<2x128xf32> -> vector<2x128xf32>
    %c0_27 = arith.constant 0 : index
    %c0_28 = arith.constant 0 : index
    %32 = vector.load %arg7[%c0_27, %c0_28] : memref<1x128xf32, #tpu.memory_space<vmem>>, vector<1x128xf32>
    %33 = vector.broadcast %32 : vector<1x128xf32> to vector<2x128xf32>
    %34 = arith.addf %31, %33 : vector<2x128xf32>
    %cst_29 = arith.constant 0.000000e+00 : f32
    %35 = vector.broadcast %cst_29 : f32 to vector<2x128xf32>
    %36 = arith.maximumf %34, %35 : vector<2x128xf32>
    %c0_30 = arith.constant 0 : index
    %c0_31 = arith.constant 0 : index
    %37 = vector.load %arg8[%c0_30, %c0_31] : memref<2x128xf32, #tpu.memory_space<vmem>>, vector<1x128xf32>
    %38 = vector.broadcast %37 : vector<1x128xf32> to vector<2x128xf32>
    %39 = arith.mulf %36, %38 : vector<2x128xf32>
    %cst_32 = arith.constant dense<0.000000e+00> : vector<2xf32>
    %40 = vector.multi_reduction <add>, %39, %cst_32 [1] : vector<2x128xf32> to vector<2xf32>
    %41 = vector.shape_cast %40 : vector<2xf32> to vector<2x1xf32>
    %c0_33 = arith.constant 0 : index
    %42 = memref.load %arg9[%c0_33] : memref<2xf32, #tpu.memory_space<smem>>
    %43 = vector.broadcast %42 : f32 to vector<2x1xf32>
    %44 = arith.addf %41, %43 : vector<2x1xf32>
    %c1 = arith.constant 1 : index
    %c0_34 = arith.constant 0 : index
    %45 = vector.load %arg8[%c1, %c0_34] : memref<2x128xf32, #tpu.memory_space<vmem>>, vector<1x128xf32>
    %46 = vector.broadcast %45 : vector<1x128xf32> to vector<2x128xf32>
    %47 = arith.mulf %36, %46 : vector<2x128xf32>
    %cst_35 = arith.constant dense<0.000000e+00> : vector<2xf32>
    %48 = vector.multi_reduction <add>, %47, %cst_35 [1] : vector<2x128xf32> to vector<2xf32>
    %49 = vector.shape_cast %48 : vector<2xf32> to vector<2x1xf32>
    %c1_36 = arith.constant 1 : index
    %50 = memref.load %arg9[%c1_36] : memref<2xf32, #tpu.memory_space<smem>>
    %51 = vector.broadcast %50 : f32 to vector<2x1xf32>
    %52 = arith.addf %49, %51 : vector<2x1xf32>
    %53 = arith.maximumf %44, %52 : vector<2x1xf32>
    %54 = arith.minimumf %44, %52 : vector<2x1xf32>
    %55 = arith.subf %54, %53 : vector<2x1xf32>
    %56 = math.exp %55 : vector<2x1xf32>
    %cst_37 = arith.constant 1.000000e+00 : f32
    %57 = vector.broadcast %cst_37 : f32 to vector<2x1xf32>
    %58 = arith.addf %57, %56 : vector<2x1xf32>
    %59 = math.log %58 : vector<2x1xf32>
    %60 = arith.addf %53, %59 : vector<2x1xf32>
    %61 = arith.subf %44, %60 : vector<2x1xf32>
    %c0_38 = arith.constant 0 : index
    %c0_39 = arith.constant 0 : index
    %62 = vector.load %arg10[%c0_38, %c0_39] : memref<2x2xf32, #tpu.memory_space<vmem>>, vector<2x1xf32>
    tpu.vector_store %arg10[%c0_38, %c0_39], %61 {strides = array<i32>} : memref<2x2xf32, #tpu.memory_space<vmem>>, vector<2x1xf32>,
    %63 = arith.subf %52, %60 : vector<2x1xf32>
    %c0_40 = arith.constant 0 : index
    %c1_41 = arith.constant 1 : index
    %64 = vector.load %arg10[%c0_40, %c1_41] : memref<2x2xf32, #tpu.memory_space<vmem>>, vector<2x1xf32>
    tpu.vector_store %arg10[%c0_40, %c1_41], %63 {strides = array<i32>} : memref<2x2xf32, #tpu.memory_space<vmem>>, vector<2x1xf32>,
    return
  }
  func.func @transform_0(%arg0: i32) -> (i32, i32) {
    %c0_i32 = arith.constant 0 : i32
    %c0_i32_0 = arith.constant 0 : i32
    return %arg0, %c0_i32 : i32, i32
  }
  func.func @transform_1(%arg0: i32) -> (i32, i32) {
    %c0_i32 = arith.constant 0 : i32
    %c0_i32_0 = arith.constant 0 : i32
    %c0_i32_1 = arith.constant 0 : i32
    return %c0_i32, %c0_i32_0 : i32, i32
  }
  func.func @transform_2(%arg0: i32) -> (i32, i32) {
    %c0_i32 = arith.constant 0 : i32
    %c0_i32_0 = arith.constant 0 : i32
    %c0_i32_1 = arith.constant 0 : i32
    return %c0_i32, %c0_i32_0 : i32, i32
  }
  func.func @transform_3(%arg0: i32) -> (i32, i32) {
    %c0_i32 = arith.constant 0 : i32
    %c0_i32_0 = arith.constant 0 : i32
    %c0_i32_1 = arith.constant 0 : i32
    return %c0_i32, %c0_i32_0 : i32, i32
  }
  func.func @transform_4(%arg0: i32) -> (i32, i32) {
    %c0_i32 = arith.constant 0 : i32
    %c0_i32_0 = arith.constant 0 : i32
    %c0_i32_1 = arith.constant 0 : i32
    return %c0_i32, %c0_i32_0 : i32, i32
  }
  func.func @transform_5(%arg0: i32) -> (i32, i32) {
    %c0_i32 = arith.constant 0 : i32
    %c0_i32_0 = arith.constant 0 : i32
    %c0_i32_1 = arith.constant 0 : i32
    return %c0_i32, %c0_i32_0 : i32, i32
  }
  func.func @transform_6(%arg0: i32) -> (i32, i32) {
    %c0_i32 = arith.constant 0 : i32
    %c0_i32_0 = arith.constant 0 : i32
    %c0_i32_1 = arith.constant 0 : i32
    return %c0_i32, %c0_i32_0 : i32, i32
  }
  func.func @transform_7(%arg0: i32) -> (i32, i32) {
    %c0_i32 = arith.constant 0 : i32
    %c0_i32_0 = arith.constant 0 : i32
    %c0_i32_1 = arith.constant 0 : i32
    return %c0_i32, %c0_i32_0 : i32, i32
  }
  func.func @transform_8(%arg0: i32) -> i32 {
    %c0_i32 = arith.constant 0 : i32
    %c0_i32_0 = arith.constant 0 : i32
    return %c0_i32 : i32
  }
  func.func @transform_9(%arg0: i32) -> (i32, i32) {
    %c0_i32 = arith.constant 0 : i32
    %c0_i32_0 = arith.constant 0 : i32
    return %arg0, %c0_i32 : i32, i32
  }
}

</mosaic_0001>

<bundles_post_ra>
// kernel: tpu_custom_call.1
= control target key start
LH: loop header
LB: loop body
LE: loop exit
PB: predicated region body
PF: predicated region fallthrough
CT: control target
= control target key end

     0   :  { %14 = vsyncpa [#allocation4], 0  ;;  %s994_s0 = inlined_call_operand.hbm [shape: f32[2,63], index: 0, kind: input, shape index: {}]   ;;  %s995_s1 = inlined_call_operand.hbm [shape: bf16[64,256], index: 1, kind: input, shape index: {}]   ;;  %s996_s2 = inlined_call_operand.vmem [shape: f32[1,256], index: 2, kind: input, shape index: {}]   ;;  %s997_s3 = inlined_call_operand.hbm [shape: bf16[256,128], index: 3, kind: input, shape index: {}]   ;;  %s998_s4 = inlined_call_operand.vmem [shape: f32[1,128], index: 4, kind: input, shape index: {}]   ;;  %s999_s5 = inlined_call_operand.hbm [shape: bf16[128,128], index: 5, kind: input, shape index: {}]   ;;  %s1000_s6 = inlined_call_operand.vmem [shape: f32[1,128], index: 6, kind: input, shape index: {}]   ;;  %s1001_s7 = inlined_call_operand.vmem [shape: f32[2,128], index: 7, kind: input, shape index: {}]   ;;  %s1002_s8 = inlined_call_operand.vmem [shape: f32[2], index: 8, kind: input, shape index: {}]   ;;  %s1003_s9 = inlined_call_operand.hbm [shape: f32[2,2], index: 9, kind: output, shape index: {}]  }
   0x1   :  { %15 = vsyncpa [#allocation8], 0 }
   0x2   :  { %16 = vsyncpa [#allocation11], 0 }
   0x3   :  { %17 = vsyncpa [#allocation6], 0 }
   0x4   :  { %18 = vsyncpa [#allocation5], 0  ;;  %s898_s30 = smov [#allocation7]  }
   0x5   :  { %s34_s10 = sshll.u32 %s898_s30, 4  ;;  %s35_s10 = int_to_ptr.vmem [resolvable:$true] %s34_s10 }
   0x6   :  { %s784_s11 = scalar_lea.vmem %s35_s10, 1024  ;;  %p789_p1 = scmp.lt.s32.totalorder %s35_s10, %s35_s10 }
   0x7   :  { %p785_p0 = scmp.ne.s32.totalorder %s35_s10, %s784_s11  ;;  %p790_p2 = scmp.lt.s32.totalorder %s784_s11, %s784_s11 }
   0x9   :  { %p791_p3 = por %p790_p2, %p789_p1 }
   0xb   :  { %p792_p4 = pnand %p791_p3, %p785_p0 }
   0xd   :  { %795 = shalt.err (!%p792_p4)
}
   0xe   :  { %s899_s12 = smov 128   ;;  %s900_s13 = smov 8  }
   0xf   :  { %40 = dma.hbm_to_vmem [thread:$0]  %s995_s1, 1024, %s35_s10, [#allocation8], %s899_s12, %s899_s12, %s900_s13  }
  0x10   :  { %s901_s16 = smov [#allocation3]   ;;  %s902_s18 = smov [#allocation9]  }
  0x11   :  { %s25_s17 = sshll.u32 %s901_s16, 4  ;;  %s48_s19 = sshll.u32 %s902_s18, 4  ;;  %s26_s17 = int_to_ptr.vmem [resolvable:$true] %s25_s17  ;;  %s49_s19 = int_to_ptr.vmem [resolvable:$true] %s48_s19 }
  0x12   :  { %s804_s20 = scalar_lea.vmem %s26_s17, 32  ;;  %p809_p6 = scmp.lt.s32.totalorder %s26_s17, %s26_s17 }
  0x13   :  { %p805_p5 = scmp.ne.s32.totalorder %s26_s17, %s804_s20  ;;  %p810_p7 = scmp.lt.s32.totalorder %s804_s20, %s804_s20 }
  0x15   :  { %p811_p8 = por %p810_p7, %p809_p6 }
  0x17   :  { %p812_p9 = pnand %p811_p8, %p805_p5 }
  0x19   :  { %815 = shalt.err (!%p812_p9)
}
  0x1a   :  { %28 = dma.hbm_to_vmem [thread:$0]  %s994_s0, 32, %s26_s17, [#allocation4]  }
  0x1b   :  { %s824_s23 = scalar_lea.vmem %s49_s19, 2048  ;;  %p829_p11 = scmp.lt.s32.totalorder %s49_s19, %s49_s19 }
  0x1c   :  { %p825_p10 = scmp.ne.s32.totalorder %s49_s19, %s824_s23  ;;  %p830_p12 = scmp.lt.s32.totalorder %s824_s23, %s824_s23 }
  0x1e   :  { %p831_p13 = por %p830_p12, %p829_p11 }
  0x20   :  { %p832_p0 = pnand %p831_p13, %p825_p10 }
  0x22   :  { %835 = shalt.err (!%p832_p0)
}
  0x23   :  { %s903_s1 = smov 64   ;;  %s904_s24 = smov 4  }
  0x24   :  { %54 = dma.hbm_to_vmem [thread:$0]  %s997_s3, 2048, %s49_s19, [#allocation8], %s903_s1, %s903_s1, %s904_s24  }
  0x25   :  { %s905_s27 = smov [#allocation10]   ;;  %s79_s0 = sshll.u32 %s1002_s8, 4  ;;  %s80_s0 = int_to_ptr.vmem [resolvable:$true] %s79_s0 }
  0x26   :  { %s62_s28 = sshll.u32 %s905_s27, 4  ;;  %s63_s28 = int_to_ptr.vmem [resolvable:$true] %s62_s28 }
  0x27   :  { %s844_s10 = scalar_lea.vmem %s63_s28, 1024  ;;  %p849_p2 = scmp.lt.s32.totalorder %s63_s28, %s63_s28 }
  0x28   :  { %p845_p1 = scmp.ne.s32.totalorder %s63_s28, %s844_s10  ;;  %p850_p3 = scmp.lt.s32.totalorder %s844_s10, %s844_s10 }
  0x2a   :  { %p851_p4 = por %p850_p3, %p849_p2 }
  0x2c   :  { %p852_p5 = pnand %p851_p4, %p845_p1 }
  0x2e   :  { %855 = shalt.err (!%p852_p5)
}
  0x2f   :  { %68 = dma.hbm_to_vmem [thread:$0]  %s999_s5, 1024, %s63_s28, [#allocation11], %s903_s1, %s903_s1, %s904_s24  }
  0x30   :  { %s856_s3 = scalar_lea.vmem %s80_s0, 16  ;;  %p861_p7 = scmp.lt.s32.totalorder %s80_s0, %s80_s0 }
  0x31   :  { %p857_p6 = scmp.ne.s32.totalorder %s80_s0, %s856_s3  ;;  %p862_p8 = scmp.lt.s32.totalorder %s856_s3, %s856_s3 }
  0x33   :  { %p863_p9 = por %p862_p8, %p861_p7 }
  0x35   :  { %p864_p10 = pnand %p863_p9, %p857_p6 }
  0x37   :  { %867 = shalt.err (!%p864_p10)
}
  0x38   :  { %s906_s8 = smov [#allocation12]  }
  0x39   :  { %82 = dma.vmem_to_smem %s80_s0, 16, %s906_s8, [#allocation6]  }
  0x3a   :  { %888 = dma.done.wait [#allocation4], 32  }
  0x3b   :  { %889 = vsyncadd [#allocation4], 4294967264 }
  0x3c   :  { %890 = dma.done.wait [#allocation8], 3072  }
  0x3d   :  { %891 = vsyncadd [#allocation8], 4294964224 }
  0x3e   :  { %892 = dma.done.wait [#allocation11], 1024  }
  0x3f   :  { %893 = vsyncadd [#allocation11], 4294966272 }
  0x40   :  { %894 = dma.done.wait [#allocation6], 16  }
  0x41   :  { %895 = vsyncadd [#allocation6], 4294967280 }
  0x42   :  { %98 = sfence }
  0x43   :  { %v736_v0 = vld [vmem:[#allocation7 + $0x34] ss:$8 sps:$4 sm:$0xff]   ;;  %vm100_vm0 = vcmask 516600   ;;  %v738_v1 = vld [vmem:[#allocation7 + $0x30] ss:$8 sps:$4 sm:$0xff]   ;;  %v907_v2 = vmov 0   ;;  %v117_v34 = vlaneseq }
  0x44   :  { %101 = vst.msk [vmem:[#allocation2] sm:$0x1] %vm100_vm0, %v907_v2  ;;  %203 = vmatprep.mubr.bf16.mxu0 %v907_v2  ;;  %179 = vmatprep.subr.bf16.mxu0 %v736_v0  ;;  %v739_v3 = vld [vmem:[#allocation7 + $0x24] ss:$8 sps:$4 sm:$0xff]   ;;  %v741_v4 = vld [vmem:[#allocation7 + $0x20] ss:$8 sps:$4 sm:$0xff]  }
  0x45   :  { %180 = vmatpush1.bf16.msra.mxu0 %v738_v1  ;;  %v742_v5 = vld [vmem:[#allocation7 + $0x14] ss:$8 sps:$4 sm:$0xff]   ;;  %vm104_vm1 = vcmask 507904   ;;  %v744_v6 = vld [vmem:[#allocation7 + $0x10] ss:$8 sps:$4 sm:$0xff]   ;;  %v752_v14 = vld [vmem:[#allocation9 + $0x68] sm:$0xff]  }
  0x46   :  { %181 = vmatprep.subr.bf16.mxu0 %v739_v3  ;;  %v102_v7 = vld [vmem:[#allocation3] sm:$0x3]  ;;  %v745_v8 = vld [vmem:[#allocation7 + $0x4] ss:$8 sps:$4 sm:$0xff]   ;;  %v750_v12 = vld [vmem:[#allocation9 + $0x70] sm:$0xff]   ;;  %vm167_vm2 = vcmask 523264  }
  0x47   :  { %v103_v9 = vpack.c.bf16 %v102_v7, %v102_v7  ;;  %v748_v10 = vld [vmem:[#allocation9 + $0x78] sm:$0xff]   ;;  %v751_v13 = vld [vmem:[#allocation9 + $0x30] sm:$0xff]   ;;  %v747_v15 = vld [vmem:[#allocation7] ss:$8 sps:$4 sm:$0xff]   ;;  %v908_v29 = vmov 0.0   ;;  %v118_v35 = vshrl.u32 %v117_v34, 7 }
  0x48   :  { %v749_v11 = vld [vmem:[#allocation9 + $0x38] sm:$0xff]   ;;  %643 = vmatprep.subr.bf16.mxu1 %v748_v10  ;;  %v753_v16 = vld [vmem:[#allocation9 + $0x28] sm:$0xff]   ;;  %v754_v17 = vld [vmem:[#allocation9 + $0x60] sm:$0xff]   ;;  %vm909_vm3 = vmmov 0   ;;  %vm553_vm4 = vcmask 1041408   ;;  %s557_s19 = sld [smem:[#allocation12]] }
  0x49   :  { %182 = vmatpush1.bf16.msra.mxu0 %v741_v4  ;;  %105 = vst.msk [vmem:[#allocation2] sm:$0x1] %vm104_vm1, %v103_v9  ;;  %644 = vmatpush3.bf16.msra.mxu1 %v749_v11  ;;  %v755_v19 = vld [vmem:[#allocation9 + $0x20] sm:$0xff]   ;;  %v756_v20 = vld [vmem:[#allocation9 + $0x58] sm:$0xff]   ;;  %v758_v22 = vld [vmem:[#allocation9 + $0x50] sm:$0xff]   ;;  %v119_v36 = vsub.s32 0, %v118_v35 }
  0x4a   :  { %183 = vmatprep.subr.bf16.mxu0 %v742_v5  ;;  %645 = vmatprep.subr.bf16.mxu1 %v750_v12  ;;  %v757_v21 = vld [vmem:[#allocation9 + $0x18] sm:$0xff]   ;;  %v759_v23 = vld [vmem:[#allocation9 + $0x10] sm:$0xff]   ;;  %v760_v24 = vld [vmem:[#allocation9 + $0x48] sm:$0xff]   ;;  %v123_v38 = vsub.s32 1, %v118_v35  ;;  %s642_s20 = sld [smem:[#allocation12 + $0x1]]  ;;  %vm582_vm5 = vcmask 1024  }
  0x4b   :  { %v761_v25 = vld [vmem:[#allocation9 + $0x8] sm:$0xff]   ;;  %v762_v26 = vld [vmem:[#allocation9 + $0x40] sm:$0xff]   ;;  %v764_v28 = vld [vmem:[#allocation10 + $0x38] sm:$0xff]   ;;  %vm585_vm6 = vcmask 9224  }
  0x4c   :  { %v763_v27 = vld [vmem:[#allocation9] sm:$0xff]   ;;  %v765_v30 = vld [vmem:[#allocation10 + $0x30] sm:$0xff]   ;;  %v766_v31 = vld [vmem:[#allocation10 + $0x28] sm:$0xff]  }
  0x4d   :  { %184 = vmatpush1.bf16.msra.mxu0 %v744_v6  ;;  %646 = vmatpush3.bf16.msra.mxu1 %v751_v13  ;;  %v767_v32 = vld [vmem:[#allocation10 + $0x20] sm:$0xff]   ;;  %v768_v33 = vld [vmem:[#allocation10 + $0x18] sm:$0xff]   ;;  %v769_v51 = vld [vmem:[#allocation10 + $0x10] sm:$0xff]  }
  0x4e   :  { %185 = vmatprep.subr.bf16.mxu0 %v745_v8  ;;  %647 = vmatprep.subr.bf16.mxu1 %v752_v14  ;;  %v115_v37 = vld [vmem:[%s996_s2] sm:$0x3]  ;;  %v770_v52 = vld [vmem:[#allocation10 + $0x8] sm:$0xff]   ;;  %v771_v53 = vld [vmem:[#allocation10] sm:$0xff]  }
  0x4f   :  { %v120_v39 = vrot.slane %v115_v37, %v119_v36  ;;  %v124_v40 = vrot.slane %v115_v37, %v123_v38  ;;  %v614_v55 = vld [vmem:[%s998_s4] ss:$0 sm:$0xff]  ;;  %v641_v13 = vld [vmem:[%s1001_s7 + $0x1] ss:$0 sm:$0xff] }
  0x50   :  { %v106_v18 = vld [vmem:[#allocation2] sm:$0x1] }
  0x51   :  { %186 = vmatpush1.bf16.msra.mxu0 %v747_v15  ;;  %648 = vmatpush3.bf16.msra.mxu1 %v753_v16  ;;  %v631_v63 = vld [vmem:[%s1000_s6] ss:$0 sm:$0xff] }
  0x52   :  { %649 = vmatprep.subr.bf16.mxu1 %v754_v17  ;;  %683 = vmatprep.subr.bf16.mxu0 %v908_v29  ;;  %v640_v10 = vld [vmem:[%s1001_s7] ss:$0 sm:$0xff]  ;;  %s910_s7 = smov [#allocation13]  }
  0x53   :  { %s593_s21 = sshll.u32 %s910_s7, 4  ;;  %s594_s21 = int_to_ptr.vmem [resolvable:$true] %s593_s21 }
  0x54   :  { %613 = vmatmul.mubr.msk.bf16.vlgmr.msra.gmra.mxu0 %vm167_vm2, %v106_v18  ;;  %s868_s22 = scalar_lea.vmem %s594_s21, 32  ;;  %p873_p12 = scmp.lt.s32.totalorder %s594_s21, %s594_s21 }
  0x55   :  { %650 = vmatpush3.bf16.msra.mxu1 %v755_v19  ;;  %684 = vmatpush3.bf16.msra.mxu0 %v764_v28  ;;  %p869_p11 = scmp.ne.s32.totalorder %s594_s21, %s868_s22  ;;  %p874_p13 = scmp.lt.s32.totalorder %s868_s22, %s868_s22 }
  0x56   :  { %651 = vmatprep.subr.bf16.mxu1 %v756_v20  ;;  %685 = vmatprep.subr.bf16.mxu0 %v908_v29  ;;  %v558_v20 = vstv %s557_s19 }
  0x57   :  { %699 = vmatprep.mubr.msk.bf16.mxu0 %vm909_vm3, %v908_v29  ;;  %p875_p0 = por %p874_p13, %p873_p12 }
  0x59   :  { %652 = vmatpush3.bf16.msra.mxu1 %v757_v21  ;;  %686 = vmatpush3.bf16.msra.mxu0 %v765_v30  ;;  %v570_v21 = vstv %s642_s20  ;;  %p876_p1 = pnand %p875_p0, %p869_p11 }
  0x5a   :  { %653 = vmatprep.subr.bf16.mxu1 %v758_v22  ;;  %687 = vmatprep.subr.bf16.mxu0 %v908_v29 }
  0x5d   :  { %654 = vmatpush3.bf16.msra.mxu1 %v759_v23  ;;  %688 = vmatpush3.bf16.msra.mxu0 %v766_v31 }
  0x5e   :  { %655 = vmatprep.subr.bf16.mxu1 %v760_v24  ;;  %689 = vmatprep.subr.bf16.mxu0 %v908_v29 }
  0x61   :  { %656 = vmatpush3.bf16.msra.mxu1 %v761_v25  ;;  %690 = vmatpush3.bf16.msra.mxu0 %v767_v32 }
  0x62   :  { %657 = vmatprep.subr.bf16.mxu1 %v762_v26  ;;  %691 = vmatprep.subr.bf16.mxu0 %v908_v29 }
  0x65   :  { %658 = vmatpush3.bf16.msra.mxu1 %v763_v27  ;;  %692 = vmatpush3.bf16.msra.mxu0 %v768_v33 }
  0x66   :  { %703 = vmatprep.subr.bf16.mxu1 %v908_v29  ;;  %693 = vmatprep.subr.bf16.mxu0 %v908_v29 }
  0x69   :  { %694 = vmatpush3.bf16.msra.mxu0 %v769_v51 }
  0x6a   :  { %695 = vmatprep.subr.bf16.mxu0 %v908_v29 }
  0x6d   :  { %696 = vmatpush3.bf16.msra.mxu0 %v770_v52 }
  0x6e   :  { %697 = vmatprep.subr.bf16.mxu0 %v908_v29 }
  0x71   :  { %698 = vmatpush3.bf16.msra.mxu0 %v771_v53 }
 0x114   :  { %v205_v41 = vpop.f32.mrf.mxu0 }
 0x115   :  { %v206_v42 = vadd.f32 %v205_v41, %v120_v39 }
 0x116   :  { %v207_v43 = vpop.f32.mrf.mxu0 }
 0x117   :  { %v208_v44 = vadd.f32 %v207_v43, %v124_v40  ;;  %v212_v45 = vmax.f32 %v206_v42, 0.0 }
 0x118   :  { %v209_v46 = vpop.f32.mrf.mxu0 }
 0x119   :  { %v213_v47 = vmax.f32 %v208_v44, 0.0  ;;  %v214_v50 = vpack.c.bf16 %v212_v45, %v212_v45 }
 0x11a   :  { %v210_v48 = vpop.f32.mrf.mxu0 }
 0x11b   :  { %v215_v49 = vpack.c.bf16 %v213_v47, %v213_v47 }
 0x11d   :  { %383 = vmatprep.mubr.bf16.mxu1 %v215_v49 }
 0x11e   :  { %384 = vmatmul.mubr.bf16.vlgmr.msra.gmra.mxu1 %v214_v50 }
 0x11f   :  { %704 = vmatpush3.bf16.msra.mxu1 %v764_v28  ;;  %719 = vmatprep.mubr.msk.bf16.mxu1 %vm909_vm3, %v908_v29 }
 0x120   :  { %705 = vmatprep.subr.bf16.mxu1 %v908_v29 }
 0x123   :  { %706 = vmatpush3.bf16.msra.mxu1 %v765_v30 }
 0x124   :  { %707 = vmatprep.subr.bf16.mxu1 %v908_v29 }
 0x127   :  { %708 = vmatpush3.bf16.msra.mxu1 %v766_v31 }
 0x128   :  { %709 = vmatprep.subr.bf16.mxu1 %v908_v29 }
 0x12b   :  { %710 = vmatpush3.bf16.msra.mxu1 %v767_v32 }
 0x12c   :  { %711 = vmatprep.subr.bf16.mxu1 %v908_v29 }
 0x12f   :  { %712 = vmatpush3.bf16.msra.mxu1 %v768_v33 }
 0x130   :  { %713 = vmatprep.subr.bf16.mxu1 %v908_v29 }
 0x133   :  { %714 = vmatpush3.bf16.msra.mxu1 %v769_v51 }
 0x134   :  { %715 = vmatprep.subr.bf16.mxu1 %v908_v29 }
 0x137   :  { %716 = vmatpush3.bf16.msra.mxu1 %v770_v52 }
 0x138   :  { %717 = vmatprep.subr.bf16.mxu1 %v908_v29 }
 0x13b   :  { %718 = vmatpush3.bf16.msra.mxu1 %v771_v53 }
 0x1de   :  { %v659_v54 = vpop.f32.mrf.mxu1 }
 0x1e0   :  { %v660_v56 = vpop.f32.mrf.mxu1 }
 0x1e1   :  { %v661_v57 = vadd.f32 %v660_v56, %v659_v54 }
 0x1e2   :  { %v662_v58 = vpop.f32.mrf.mxu1 }
 0x1e3   :  { %v386_v59 = vadd.f32 %v661_v57, %v614_v55 }
 0x1e4   :  { %v663_v60 = vpop.f32.mrf.mxu1 }
 0x1e5   :  { %v391_v61 = vmax.f32 %v386_v59, 0.0 }
 0x1e7   :  { %v392_v62 = vpack.c.bf16 %v391_v61, %v391_v61 }
 0x1e9   :  { %700 = vmatmul.mubr.bf16.vlgmr.msra.gmra.mxu0 %v392_v62 }
 0x2a9   :  { %v498_v0 = vpop.f32.mrf.mxu0 }
 0x2aa   :  { %v499_v1 = vadd.f32 %v631_v63, %v498_v0 }
 0x2ab   :  { %v701_v2 = vpop.f32.mrf.mxu0 }
 0x2ac   :  { %v504_v3 = vmax.f32 %v499_v1, 0.0 }
 0x2ad   :  { %v501_v4 = vpop.f32.mrf.mxu0 }
 0x2ae   :  { %v505_v5 = vpack.c.bf16 %v504_v3, %v504_v3 }
 0x2af   :  { %v702_v6 = vpop.f32.mrf.mxu0 }
 0x2b0   :  { %720 = vmatmul.mubr.bf16.vlgmr.msra.gmra.mxu1 %v505_v5 }
 0x370   :  { %v540_v7 = vpop.f32.mrf.mxu1 }
 0x371   :  { %v541_v8 = vadd.f32 %v631_v63, %v540_v7 }
 0x372   :  { %v721_v9 = vpop.f32.mrf.mxu1 }
 0x373   :  { %v546_v11 = vmax.f32 %v541_v8, 0.0 }
 0x374   :  { %v543_v12 = vpop.f32.mrf.mxu1 }
 0x375   :  { %v552_v14 = vmul.f32 %v640_v10, %v546_v11  ;;  %v565_v17 = vmul.f32 %v641_v13, %v546_v11 }
 0x376   :  { %v722_v15 = vpop.f32.mrf.mxu1 }
 0x377   :  { %v554_v16 = vsel %vm553_vm4, %v552_v14, 0.0  ;;  %v566_v18 = vsel %vm553_vm4, %v565_v17, 0.0 }
 0x378   :  { %555 = vadd.xlane.f32.xlu0 %v554_v16 }
 0x37c   :  { %567 = vadd.xlane.f32.xlu0 %v566_v18 }
 0x401   :  { %v556_v19 = vpop.xlane.xlu0 %555 }
 0x402   :  { %v559_v23 = vadd.f32 %v558_v20, %v556_v19 }
 0x405   :  { %v568_v22 = vpop.xlane.xlu0 %567 }
 0x406   :  { %v571_v24 = vadd.f32 %v570_v21, %v568_v22 }
 0x408   :  { %v572_v25 = vmax.f32 %v559_v23, %v571_v24  ;;  %v573_v26 = vmin.f32 %v559_v23, %v571_v24 }
 0x40a   :  { %v574_v27 = vsub.f32 %v573_v26, %v572_v25 }
 0x40c   :  { %v575_v28 = vmul.f32 1.442695, %v574_v27 }
 0x40e   :  { %772 = vpow2.f32 %v575_v28 }
 0x41b   :  { %v773_v29 = vpop.eup %772 }
 0x41c   :  { %v577_v30 = vadd.f32 1.0, %v773_v29 }
 0x41e   :  { %774 = vlog2.f32 %v577_v30 }
 0x42b   :  { %v775_v31 = vpop.eup %774 }
 0x42c   :  { %v579_v32 = vmul.f32 0.6931472, %v775_v31 }
 0x42e   :  { %v580_v33 = vadd.f32 %v579_v32, %v572_v25 }
 0x430   :  { %v581_v34 = vsub.f32 %v559_v23, %v580_v33  ;;  %v584_v35 = vsub.f32 %v571_v24, %v580_v33 }
 0x432   :  { %583 = vst.msk [vmem:[#allocation13] sm:$0x3] %vm582_vm5, %v581_v34 }
 0x433   :  { %586 = vst.msk [vmem:[#allocation13] sm:$0x3] %vm585_vm6, %v584_v35 }
 0x434   :  { %879 = shalt.err (!%p876_p1)
}
 0x435   :  { %596 = dma.vmem_to_hbm [thread:$0]  %s594_s21, 32, %s1003_s9, [#allocation5]  }
 0x436   :  { %896 = dma.done.wait [#allocation5], 32  }
 0x437   :  { %897 = vsyncadd [#allocation5], 4294967264 }
 0x438   :  { %600 = vsyncpa [#allocation4], 1 }
 0x439   :  { %601 = vsyncpa [#allocation8], 1 }
 0x43a   :  { %602 = vsyncpa [#allocation11], 1 }
 0x43b   :  { %603 = vsyncpa [#allocation5], 1 }
 0x43c   :  { %604 = vsyncpa [#allocation6], 1 }

</bundles_post_ra>
